<compile_context>
chip_gen: v5e
topology: v5e:2x2
jax: 0.10.0
libtpu: 0.0.40
codegen_flags: <defaults>
</compile_context>

<pallas_src>
import functools

import numpy as np
import jax
import jax.numpy as jnp
from jax.experimental import pallas as pl
from jax.experimental.pallas import tpu as pltpu


def _sinusoid_table(n_position: int, d_hid: int) -> np.ndarray:
    """Deterministic sinusoid positional encoding table, (1, n_position, d_hid)."""
    pos = np.arange(n_position, dtype=np.float64)[:, None]            # (N, 1)
    hid = np.arange(d_hid, dtype=np.float64)[None, :]                  # (1, D)
    angle = pos / np.power(10000.0, 2.0 * (hid // 2) / d_hid)          # (N, D)
    table = np.empty_like(angle)
    table[:, 0::2] = np.sin(angle[:, 0::2])
    table[:, 1::2] = np.cos(angle[:, 1::2])
    return table[None].astype(np.float32)                              # (1, N, D)


def _posenc_layernorm_kernel(x_ref, pe_ref, g_ref, b_ref, o_ref, *, eps, inv_d):
    # Fused: (x + pos_table window) -> LayerNorm over the hidden dim.
    h = x_ref[...] + pe_ref[...]                        # (1, tS, D)
    # Single-pass statistics: two independent cross-lane reductions.
    s1 = jnp.sum(h, axis=-1, keepdims=True)
    s2 = jnp.sum(h * h, axis=-1, keepdims=True)
    mu = s1 * inv_d
    var = jnp.maximum(s2 * inv_d - mu * mu, 0.0)        # biased var == torch LayerNorm
    inv = jax.lax.rsqrt(var + eps)                      # EUP rsqrt
    o_ref[...] = ((h - mu) * inv * g_ref[...] + b_ref[...]).astype(o_ref.dtype)


def _vmem_budget():
    """(vmem_limit_bytes, block byte budget) sized from the actual chip's VMEM."""
    try:
        cap = int(pltpu.get_tpu_info().vmem_capacity_bytes)   # 128 MiB v5e/v6e, 64 MiB v7x/TC
    except Exception:
        cap = 64 * 1024 * 1024                                # conservative fallback
    vmem_limit = int(cap * 0.85)       # leave headroom for compiler scratch
    block_budget = int(cap * 0.60)     # what we let the double-buffered blocks occupy
    return vmem_limit, block_budget


def encoder_embed(x, pos_table, gamma, beta, *, eps: float = 1e-6,
                  tile_s: int | None = None, out_dtype=None):
    """Encoder front-end: LayerNorm(x + pos_table[:, :S]) (dropout = identity at eval).

    x:          (B, S, D) f32
    pos_table:  (1, N, D) f32, N >= S — the [:S] window is selected by the BlockSpec.
    gamma/beta: (1, 1, D) f32 LayerNorm affine parameters.
    """
    B, S, D = x.shape
    assert pos_table.shape[0] == 1 and pos_table.shape[2] == D and pos_table.shape[1] >= S

    itemsize = x.dtype.itemsize
    vmem_limit, block_budget = _vmem_budget()

    if tile_s is None:
        # Per grid step the pipeline holds ~6 blocks of (1, tile_s, D):
        # x (double-buffered) + pos (double-buffered) + out (double-buffered).
        max_rows = max(8, block_budget // (6 * D * itemsize))
        tile_s = min(S, (max_rows // 8) * 8)
    tile_s = min(tile_s, S)
    if tile_s < S:
        tile_s = max(8, (tile_s // 8) * 8)   # (8,128) tiling constraint on partial tiles
    grid_s = pl.cdiv(S, tile_s)

    # v7x megacore: guarantee >= 2 "parallel" grid steps when splitting is legal,
    # so both TensorCores get work (no effect on correctness for v5e/v6e).
    if B * grid_s < 2 and S >= 16:
        half = -(-S // 2)
        tile_s = max(8, -(-half // 8) * 8)
        grid_s = pl.cdiv(S, tile_s)

    out_dtype = out_dtype if out_dtype is not None else x.dtype
    kernel = functools.partial(_posenc_layernorm_kernel, eps=eps, inv_d=1.0 / D)

    return pl.pallas_call(
        kernel,
        out_shape=jax.ShapeDtypeStruct((B, S, D), out_dtype),
        grid_spec=pltpu.PrefetchScalarGridSpec(
            num_scalar_prefetch=0,
            grid=(grid_s, B),   # batch innermost: pos-table block index constant across it
            in_specs=[
                pl.BlockSpec((1, tile_s, D), lambda s, b: (b, s, 0)),   # activations tile
                pl.BlockSpec((1, tile_s, D), lambda s, b: (0, s, 0)),   # pos-table window
                pl.BlockSpec((1, 1, D), lambda s, b: (0, 0, 0)),        # LayerNorm gamma
                pl.BlockSpec((1, 1, D), lambda s, b: (0, 0, 0)),        # LayerNorm beta
            ],
            out_specs=pl.BlockSpec((1, tile_s, D), lambda s, b: (b, s, 0)),
        ),
        compiler_params=pltpu.CompilerParams(
            dimension_semantics=("parallel", "parallel"),   # v7x: 2 TCs split the steps
            vmem_limit_bytes=vmem_limit,                    # generation-sized budget
        ),
    )(x, pos_table, gamma, beta)


# TODO(synk): layer_stack of EncoderLayer (self-attention + FFN) is not implemented —
#             the EncoderLayer class is not part of the provided spec.
# TODO(synk): training-mode dropout (p=0.1) not implemented; eval-mode forward is identity.


if __name__ == "__main__":
    d_hid = 32
    n_position = 200
    B, S = 2, 8
    eps = 1e-6

    pos_table = jnp.asarray(_sinusoid_table(n_position, d_hid))        # (1, 200, 32)
    gamma = jnp.ones((1, 1, d_hid), jnp.float32)                       # default LayerNorm weight
    beta = jnp.zeros((1, 1, d_hid), jnp.float32)                       # default LayerNorm bias

    key = jax.random.PRNGKey(0)
    x = jax.random.normal(key, (B, S, d_hid), dtype=jnp.float32)

    out = encoder_embed(x, pos_table, gamma, beta, eps=eps)
    out = jax.block_until_ready(out)

    # Pure-JAX reference: Encoder front-end in eval mode (dropout = identity).
    h = x + pos_table[:, :S]
    mu = h.mean(-1, keepdims=True)
    var = ((h - mu) ** 2).mean(-1, keepdims=True)
    ref = (h - mu) / jnp.sqrt(var + eps) * gamma + beta

    assert out.shape == (B, S, d_hid)
    assert jnp.allclose(out, ref, atol=1e-5, rtol=1e-5), "mismatch vs reference"

    print("KERNEL_OK")
</pallas_src>

<mosaic_0001>
module attributes {stable_mosaic.version = 11 : i64} {
  func.func @_posenc_layernorm_kernel(%arg0: i32, %arg1: i32, %arg2: memref<1x8x32xf32, #tpu.memory_space<vmem>>, %arg3: memref<1x8x32xf32, #tpu.memory_space<vmem>>, %arg4: memref<1x1x32xf32, #tpu.memory_space<vmem>>, %arg5: memref<1x1x32xf32, #tpu.memory_space<vmem>>, %arg6: memref<1x8x32xf32, #tpu.memory_space<vmem>>) attributes {dimension_semantics = [#tpu.dimension_semantics<parallel>, #tpu.dimension_semantics<parallel>], iteration_bounds = array<i64: 1, 2>, scalar_prefetch = 0 : i64, scratch_operands = 0 : i64, tpu.core_type = #tpu.core_type<tc>, window_params = [{transform_indices = @transform_0, window_bounds = array<i64: 1, 8, 32>}, {transform_indices = @transform_1, window_bounds = array<i64: 1, 8, 32>}, {pipeline_mode = #tpu.pipeline_mode<synchronous>, transform_indices = @transform_2, window_bounds = array<i64: 1, 1, 32>}, {pipeline_mode = #tpu.pipeline_mode<synchronous>, transform_indices = @transform_3, window_bounds = array<i64: 1, 1, 32>}, {transform_indices = @transform_4, window_bounds = array<i64: 1, 8, 32>}]} {
    %c0 = arith.constant 0 : index
    %c0_0 = arith.constant 0 : index
    %c0_1 = arith.constant 0 : index
    %0 = vector.load %arg2[%c0, %c0_0, %c0_1] : memref<1x8x32xf32, #tpu.memory_space<vmem>>, vector<1x8x32xf32>
    %c0_2 = arith.constant 0 : index
    %c0_3 = arith.constant 0 : index
    %c0_4 = arith.constant 0 : index
    %1 = vector.load %arg3[%c0_2, %c0_3, %c0_4] : memref<1x8x32xf32, #tpu.memory_space<vmem>>, vector<1x8x32xf32>
    %2 = arith.addf %0, %1 : vector<1x8x32xf32>
    %cst = arith.constant dense<0.000000e+00> : vector<1x8xf32>
    %3 = vector.multi_reduction <add>, %2, %cst [2] : vector<1x8x32xf32> to vector<1x8xf32>
    %4 = vector.shape_cast %3 : vector<1x8xf32> to vector<1x8x1xf32>
    %5 = arith.mulf %2, %2 : vector<1x8x32xf32>
    %cst_5 = arith.constant dense<0.000000e+00> : vector<1x8xf32>
    %6 = vector.multi_reduction <add>, %5, %cst_5 [2] : vector<1x8x32xf32> to vector<1x8xf32>
    %7 = vector.shape_cast %6 : vector<1x8xf32> to vector<1x8x1xf32>
    %cst_6 = arith.constant 3.125000e-02 : f32
    %8 = vector.broadcast %cst_6 : f32 to vector<1x8x1xf32>
    %9 = arith.mulf %4, %8 : vector<1x8x1xf32>
    %cst_7 = arith.constant 3.125000e-02 : f32
    %10 = vector.broadcast %cst_7 : f32 to vector<1x8x1xf32>
    %11 = arith.mulf %7, %10 : vector<1x8x1xf32>
    %12 = arith.mulf %9, %9 : vector<1x8x1xf32>
    %13 = arith.subf %11, %12 : vector<1x8x1xf32>
    %cst_8 = arith.constant 0.000000e+00 : f32
    %14 = vector.broadcast %cst_8 : f32 to vector<1x8x1xf32>
    %15 = arith.maximumf %13, %14 : vector<1x8x1xf32>
    %cst_9 = arith.constant 9.99999997E-7 : f32
    %16 = vector.broadcast %cst_9 : f32 to vector<1x8x1xf32>
    %17 = arith.addf %15, %16 : vector<1x8x1xf32>
    %18 = math.rsqrt %17 : vector<1x8x1xf32>
    %19 = vector.broadcast %9 : vector<1x8x1xf32> to vector<1x8x32xf32>
    %20 = arith.subf %2, %19 : vector<1x8x32xf32>
    %21 = vector.broadcast %18 : vector<1x8x1xf32> to vector<1x8x32xf32>
    %22 = arith.mulf %20, %21 : vector<1x8x32xf32>
    %c0_10 = arith.constant 0 : index
    %c0_11 = arith.constant 0 : index
    %c0_12 = arith.constant 0 : index
    %23 = vector.load %arg4[%c0_10, %c0_11, %c0_12] : memref<1x1x32xf32, #tpu.memory_space<vmem>>, vector<1x1x32xf32>
    %24 = vector.broadcast %23 : vector<1x1x32xf32> to vector<1x8x32xf32>
    %25 = arith.mulf %22, %24 : vector<1x8x32xf32>
    %c0_13 = arith.constant 0 : index
    %c0_14 = arith.constant 0 : index
    %c0_15 = arith.constant 0 : index
    %26 = vector.load %arg5[%c0_13, %c0_14, %c0_15] : memref<1x1x32xf32, #tpu.memory_space<vmem>>, vector<1x1x32xf32>
    %27 = vector.broadcast %26 : vector<1x1x32xf32> to vector<1x8x32xf32>
    %28 = arith.addf %25, %27 : vector<1x8x32xf32>
    %c0_16 = arith.constant 0 : index
    %c0_17 = arith.constant 0 : index
    %c0_18 = arith.constant 0 : index
    %29 = vector.load %arg6[%c0_16, %c0_17, %c0_18] : memref<1x8x32xf32, #tpu.memory_space<vmem>>, vector<1x8x32xf32>
    tpu.vector_store %arg6[%c0_16, %c0_17, %c0_18], %28 {strides = array<i32>} : memref<1x8x32xf32, #tpu.memory_space<vmem>>, vector<1x8x32xf32>,
    return
  }
  func.func @transform_0(%arg0: i32, %arg1: i32) -> (i32, i32, i32) {
    %c0_i32 = arith.constant 0 : i32
    %c0_i32_0 = arith.constant 0 : i32
    return %arg1, %arg0, %c0_i32 : i32, i32, i32
  }
  func.func @transform_1(%arg0: i32, %arg1: i32) -> (i32, i32, i32) {
    %c0_i32 = arith.constant 0 : i32
    %c0_i32_0 = arith.constant 0 : i32
    %c0_i32_1 = arith.constant 0 : i32
    return %c0_i32, %arg0, %c0_i32_0 : i32, i32, i32
  }
  func.func @transform_2(%arg0: i32, %arg1: i32) -> (i32, i32, i32) {
    %c0_i32 = arith.constant 0 : i32
    %c0_i32_0 = arith.constant 0 : i32
    %c0_i32_1 = arith.constant 0 : i32
    %c0_i32_2 = arith.constant 0 : i32
    return %c0_i32, %c0_i32_0, %c0_i32_1 : i32, i32, i32
  }
  func.func @transform_3(%arg0: i32, %arg1: i32) -> (i32, i32, i32) {
    %c0_i32 = arith.constant 0 : i32
    %c0_i32_0 = arith.constant 0 : i32
    %c0_i32_1 = arith.constant 0 : i32
    %c0_i32_2 = arith.constant 0 : i32
    return %c0_i32, %c0_i32_0, %c0_i32_1 : i32, i32, i32
  }
  func.func @transform_4(%arg0: i32, %arg1: i32) -> (i32, i32, i32) {
    %c0_i32 = arith.constant 0 : i32
    %c0_i32_0 = arith.constant 0 : i32
    return %arg1, %arg0, %c0_i32 : i32, i32, i32
  }
}

</mosaic_0001>

<bundles_post_ra>
// kernel: tpu_custom_call.1
= control target key start
LH: loop header
LB: loop body
LE: loop exit
PB: predicated region body
PF: predicated region fallthrough
CT: control target
= control target key end

     0   :  { %9 = vsyncpa [#allocation3], 0  ;;  %s663_s0 = inlined_call_operand.vmem [shape: f32[2,8,32], index: 0, kind: input, shape index: {}]   ;;  %s664_s1 = inlined_call_operand.vmem [shape: f32[1,200,32], index: 1, kind: input, shape index: {}]   ;;  %s665_s2 = inlined_call_operand.vmem [shape: f32[1,1,32], index: 2, kind: input, shape index: {}]   ;;  %s666_s3 = inlined_call_operand.vmem [shape: f32[1,1,32], index: 3, kind: input, shape index: {}]   ;;  %s667_s4 = inlined_call_operand.hbm [shape: f32[2,8,32], index: 4, kind: output, shape index: {}]  }
   0x1   :  { %11 = vsyncpa [#allocation3 + $0x1], 0  ;;  %s554_s15 = smov 0   ;;  %s556_s16 = smov 0  }
   0x2   :  { %s558_s17 = smov 0   ;;  %s560_s18 = smov 0  }
   0x3   :  { %s562_s19 = smov 0   ;;  %s564_s20 = smov 0  }
   0x4 LB: > { %s378_s21 = sadd.s32 4294967295, %s527_s20   ;;  %s379_s22 = sadd.s32 4294967294, %s527_s20   ;;  %s527_s20 = sphi %s564_s20, %s17_s20   ;;  %s523_s19 = sphi %s562_s19, %s674_s19   ;;  %s519_s18 = sphi %s560_s18, %s673_s18   ;;  %s515_s17 = sphi %s558_s17, %s672_s17   ;;  %s511_s16 = sphi %s556_s16, %s671_s16   ;;  %s507_s15 = sphi %s554_s15, %s670_s15  }
   0x5   : > { %s26_s23 = sadd.s32 1, %s523_s19  ;;  %s134_s24 = sadd.s32 1, %s515_s17 }
   0x6   : > { %p27_p0 = scmp.ge.s32.totalorder %s26_s23, 2  ;;  %p144_p1 = scmp.ne.s32.totalorder %s515_s17, %s511_s16 }
   0x7   : > { %p145_p2 = scmp.eq.s32.totalorder %s378_s21, 1  ;;  %p150_p3 = scmp.ne.s32.totalorder %s511_s16, %s507_s15 }
   0x8   : > { %s676_s23 = smov (%p27_p0, %s26_s23), 0  ;;  %p151_p5 = scmp.eq.s32.totalorder %s379_s22, 1 }
   0x9   : > { %p594_p4 = por %p145_p2, %p144_p1  ;;  %s129_s26 = ssub.s32 %s523_s19, %s676_s23 }
   0xa   : > { %p383_p6 = scmp.ge.s32.totalorder %s527_s20, 1  ;;  %p132_p7 = scmp.eq.s32.totalorder %s129_s26, 0 }
   0xb   : > { %p601_p8 = por %p151_p5, %p150_p3  ;;  %p192_p9 = scmp.lt.s32.totalorder %s527_s20, 3 }
   0xc   : > { %s607_s28 = scalar_select %p132_p7, %s515_s17, %s134_s24  }
   0xd   : > { %p193_p10 = pnand %p383_p6, %p192_p9 }
   0xe   : > { %p224_p11 = scmp.lt.s32.totalorder (!%p193_p10), %s519_s18, 1  ;;  %s221_s10 = sand.u32 (!%p193_p10), 1, %s511_s16  }
   0xf   : > { %196 = sbr.rel (%p193_p10) target bundleno = 187 (0xbb), region = 36  ;;  %s384_s11 = sshll.u32 (!%p193_p10), %s221_s10, 3 }
  0x10   : > { %s387_s12 = sshll.u32 (!%p193_p10), %s519_s18, 3  ;;  %s276_s6 = scalar_lea.sflag (!%p193_p10), [#allocation3], %s221_s10 }
  0x11   : > { %s287_s24 = scalar_lea.hbm (!%p193_p10), %s667_s4, %s387_s12 }
  0x12   : > { %s291_s5 = sshll.u32 (!%p193_p10), %s287_s24, 4  ;;  %s292_s5 = int_to_ptr.hbm [resolvable:$true] %s291_s5 }
  0x13   : > { %s463_s7 = sshra.s32 (!%p193_p10), %s292_s5, 4  ;;  %s464_s7 = int_to_ptr.hbm [resolvable:$true] %s463_s7 }
  0x14   : > { %s225_s29 = scalar_select %p224_p11, %s519_s18, 1  ;;  %v236_v0 = vld [vmem:[%s664_s1] sm:$0xff]  ;;  %vm238_vm0 = vcmask 261120  }
  0x15   : > { %v445_v21 = vld [vmem:[%s665_s2] ss:$0 sm:$0xff]  ;;  %s223_s18 = scalar_lea.vmem [#allocation2], %s384_s11  ;;  %s465_s8 = scalar_lea.hbm %s464_s7, 8 }
  0x16   : > { %s385_s30 = sshll.u32 %s225_s29, 3  ;;  %v446_v24 = vld [vmem:[%s666_s3] ss:$0 sm:$0xff]  ;;  %p466_p12 = scmp.ne.s32.totalorder %s464_s7, %s465_s8 }
  0x17   : > { %s230_s9 = scalar_lea.vmem %s663_s0, %s385_s30  ;;  %s289_s30 = sshll.u32 %s223_s18, 4  ;;  %s290_s30 = int_to_ptr.vmem [resolvable:$true] %s289_s30 }
  0x18   : > { %v235_v1 = vld [vmem:[%s230_s9] sm:$0xff]  ;;  %p467_p13 = pnand %p466_p12, %p594_p4  ;;  %s469_s11 = scalar_lea.hbm %s667_s4, 16 }
  0x19   : > { %v237_v2 = vadd.f32 %v236_v0, %v235_v1  ;;  %p470_p1 = scmp.lt.s32.totalorder %s464_s7, %s667_s4  ;;  %p471_p2 = scmp.lt.s32.totalorder %s469_s11, %s465_s8 }
  0x1a   : > { %p468_p0 = pneg %p467_p13 }
  0x1b   : > { %v239_v3 = vsel %vm238_vm0, %v237_v2, 0.0  ;;  %v242_v4 = vmul.f32 %v237_v2, %v237_v2  ;;  %p472_p3 = por %p471_p2, %p470_p1 }
  0x1c   : > { %240 = vadd.xlane.f32.xlu0 %v239_v3 }
  0x1d   : > { %v243_v5 = vsel %vm238_vm0, %v242_v4, 0.0  ;;  %p473_p5 = pnand %p472_p3, %p468_p0 }
  0x24   : > { %244 = vadd.xlane.f32.xlu0 %v243_v5 }
  0x8f   : > { %v241_v6 = vpop.xlane.xlu0 %240 }
  0x90   : > { %v246_v7 = vmul.f32 0.03125, %v241_v6 }
  0x92   : > { %v248_v9 = vmul.f32 %v246_v7, %v246_v7  ;;  %v262_v20 = vsub.f32 %v237_v2, %v246_v7 }
  0x97   : > { %v245_v8 = vpop.xlane.xlu0 %244 }
  0x98   : > { %v247_v10 = vmul.f32 0.03125, %v245_v8 }
  0x9a   : > { %v249_v11 = vsub.f32 %v247_v10, %v248_v9 }
  0x9c   : > { %v250_v12 = vmax.f32 %v249_v11, 0.0 }
  0x9e   : > { %v251_v13 = vadd.f32 1e-06, %v250_v12 }
  0xa0   : > { %447 = vrsqrt.f32 %v251_v13  ;;  %vm258_vm2 = vweird.f32 %v251_v13 }
  0xa6   : > { %v448_v14 = vpop.eup %447 }
  0xa7   : > { %v253_v15 = vmul.f32 %v448_v14, %v251_v13  ;;  %vm259_vm1 = vweird.f32 %v448_v14 }
  0xa8   : > { %vm260_vm3 = vmor %vm258_vm2, %vm259_vm1 }
  0xa9   : > { %v254_v16 = vmul.f32 %v448_v14, %v253_v15 }
  0xab   : > { %v255_v17 = vmul.f32 0.5, %v254_v16 }
  0xad   : > { %v256_v18 = vsub.f32 1.5, %v255_v17 }
  0xaf   : > { %v257_v19 = vmul.f32 %v448_v14, %v256_v18 }
  0xb1   : > { %v261_v22 = vsel %vm260_vm3, %v448_v14, %v257_v19 }
  0xb2   : > { %v263_v23 = vmul.f32 %v262_v20, %v261_v22 }
  0xb4   : > { %v268_v25 = vmul.f32 %v445_v21, %v263_v23 }
  0xb6   : > { %v273_v26 = vadd.f32 %v446_v24, %v268_v25 }
  0xb8   : > { %274 = vst.msk [vmem:[%s223_s18] sm:$0xff] %vm238_vm0, %v273_v26 }
  0xb9   : > { %476 = shalt.err (!%p473_p5)
}
  0xba   : > { %390 = dma.vmem_to_hbm [thread:$0]  (%p594_p4), %s290_s30, 128, %s292_s5, %s276_s6  }
  0xbb PF: > { %p396_p6 = scmp.ge.s32.totalorder %s527_s20, 2  ;;  %s303_s10 = sand.u32 1, %s507_s15  }
  0xbc   : > { %s304_s21 = scalar_lea.sflag [#allocation3], %s303_s10 }
  0xbd   : > { %p393_p7 = pnand %p396_p6, %p601_p8 }
  0xbf   : > { %p394_p9 = pneg %p393_p7 }
  0xc1   : > { %502 = dma.done.wait (%p394_p9), %s304_s21, 128  }
  0xc2   : > { %504 = vsyncadd (%p394_p9), %s304_s21, 4294967168  ;;  %s17_s20 = sadd.s32 1, %s527_s20   ;;  %s670_s15 = smov %s511_s16 }
  0xc3   : > { %p14_p10 = scmp.ge.s32.totalorder %s17_s20, 4   ;;  %s671_s16 = smov %s515_s17 }
  0xc4   : > { %s672_s17 = smov %s607_s28  ;;  %s673_s18 = smov %s523_s19 }
  0xc5   : > { %s674_s19 = smov %s676_s23  ;;  %16 = sbr.rel (!%p14_p10) target bundleno = 4 (0x4), region = 74 }
  0xca   :  { %310 = vsyncpa [#allocation3], 1 }
  0xcb   :  { %312 = vsyncpa [#allocation3 + $0x1], 1 }

</bundles_post_ra>
